<compile_context>
chip_gen: v5e
topology: v5e:2x2
jax: 0.10.0
libtpu: 0.0.40
codegen_flags: <defaults>
</compile_context>

<pallas_src>
import functools
import math

import jax
import jax.numpy as jnp
from jax.experimental import pallas as pl
from jax.experimental.pallas import tpu as pltpu

_EPS = 1e-7
_LANES = 128
_TARGET_BLOCK_BYTES = 3 * 1024 * 1024   # ~3 MiB of input per grid step
_MAX_BLOCK_ROWS = 4096                  # keeps footprint well inside v7x's 64 MiB VMEM
_VMEM_LIMIT_BYTES = 32 * 1024 * 1024    # > v5e's 16 MiB scoped default, safe everywhere


def _cdiv(a, b):
    return -(-a // b)


def _num_tensorcores():
    """TensorCores the grid's 'parallel' axis can actually use on this chip."""
    try:
        d = jax.devices()[0]
        if d.platform != "tpu":
            return 1
        kind = d.device_kind.lower()
        # Single-TC chips: v5e ("v5 lite") and v6e ("v6 lite").
        if any(s in kind for s in ("v5 lite", "v5e", "v5lite", "v6 lite", "v6e", "v6lite")):
            return 1
        # Dual-TC (v7x) and megacore (v4 / v5p) chips benefit from a 2-way split.
        if any(s in kind for s in ("7x", "v7", "v4", "v5p", "v5")):
            return 2
    except Exception:
        pass
    return 1


def _auto_block_rows(itemsize_sum):
    """Dtype-aware block rows so each grid step moves ~_TARGET_BLOCK_BYTES."""
    rows = (_TARGET_BLOCK_BYTES // (_LANES * max(1, itemsize_sum))) // 8 * 8
    return int(max(8, min(_MAX_BLOCK_ROWS, rows)))


def _masked_bce_elem(x, t, m):
    """Exact eps-regularized masked BCE, elementwise (all f32)."""
    p = jax.nn.sigmoid(x)
    return -(t * jnp.log(p + _EPS) + (1.0 - t) * jnp.log(1.0 - p + _EPS)) * m


# --------------------------------------------------------------------------- #
# Kernels
# --------------------------------------------------------------------------- #
def _partial_sum_kernel(logits_ref, targets_ref, mask_ref,
                        loss_out, mask_out,
                        *, m_rows, bpc, tm, needs_tail_mask):
    """Accumulates per-core (8, 128) partial sums of masked loss and mask."""
    p = pl.program_id(0)          # parallel axis (TensorCore slice)
    i = pl.program_id(1)          # reduction axis

    @pl.when(i == 0)
    def _init():
        loss_out[...] = jnp.zeros_like(loss_out)
        mask_out[...] = jnp.zeros_like(mask_out)

    def _accumulate(apply_row_mask):
        x = logits_ref[...].astype(jnp.float32)
        t = targets_ref[...].astype(jnp.float32)
        m = mask_ref[...].astype(jnp.float32)
        if apply_row_mask:
            # Zero x/t/m *before* the transcendentals: OOB-read garbage in the
            # overhanging rows must never reach exp/log, and clamped duplicate
            # blocks must contribute exactly zero.
            row0 = (p * bpc + i) * tm
            rows = jax.lax.broadcasted_iota(jnp.int32, (tm, _LANES), 0) + row0
            valid = rows < m_rows
            x = jnp.where(valid, x, 0.0)
            t = jnp.where(valid, t, 0.0)
            m = jnp.where(valid, m, 0.0)
        loss = _masked_bce_elem(x, t, m)
        # Vreg-wise fold (pure VPU adds) down to one (8, 128) accumulator; the
        # single cross-lane reduction + divide happens outside the kernel.
        loss_out[...] += loss.reshape(tm // 8, 8, _LANES).sum(axis=0)
        mask_out[...] += m.reshape(tm // 8, 8, _LANES).sum(axis=0)

    if needs_tail_mask:
        # Only the last / clamped-duplicate block pays for the row-validity
        # selects; interior blocks take the clean path.
        is_tail = (p * bpc + i + 1) * tm > m_rows

        @pl.when(is_tail)
        def _masked_path():
            _accumulate(True)

        @pl.when(jnp.logical_not(is_tail))
        def _clean_path():
            _accumulate(False)
    else:
        _accumulate(False)


def _elementwise_kernel(logits_ref, targets_ref, mask_ref, out_ref):
    x = logits_ref[...].astype(jnp.float32)
    t = targets_ref[...].astype(jnp.float32)
    m = mask_ref[...].astype(jnp.float32)
    out_ref[...] = _masked_bce_elem(x, t, m).astype(out_ref.dtype)


# --------------------------------------------------------------------------- #
# pallas_call wrappers
# --------------------------------------------------------------------------- #
def _reduced_sums(l2d, t2d, m2d, m_rows, block_rows):
    """(8,128)-folded partial sums of masked loss and mask over [m_rows,128] slabs."""
    if block_rows is None:
        block_rows = _auto_block_rows(sum(a.dtype.itemsize for a in (l2d, t2d, m2d)))
    tm = min(block_rows, (m_rows // 8) * 8)   # multiple of 8 (m_rows >= 8 here)
    n_blocks = _cdiv(m_rows, tm)
    n_par = max(1, min(_num_tensorcores(), n_blocks))
    bpc = _cdiv(n_blocks, n_par)
    needs_tail_mask = (n_par * bpc * tm) > m_rows

    def in_idx(p, i):
        # Clamp so no block DMA is ever fully out of bounds; clamped duplicate
        # blocks contribute exactly zero via the in-kernel row-validity mask.
        return (jnp.minimum(p * bpc + i, n_blocks - 1), 0)

    kernel = functools.partial(_partial_sum_kernel, m_rows=m_rows, bpc=bpc,
                               tm=tm, needs_tail_mask=needs_tail_mask)
    row_spec = pl.BlockSpec((tm, _LANES), in_idx)
    acc_spec = pl.BlockSpec((8, _LANES), lambda p, i: (p, 0))

    n_bulk = m_rows * _LANES
    in_bytes = sum(int(a.size) * a.dtype.itemsize for a in (l2d, t2d, m2d))
    cost = pl.CostEstimate(flops=9 * n_bulk, transcendentals=3 * n_bulk,
                           bytes_accessed=in_bytes + 2 * n_par * 8 * _LANES * 4)

    loss_part, mask_part = pl.pallas_call(
        kernel,
        out_shape=(jax.ShapeDtypeStruct((n_par * 8, _LANES), jnp.float32),
                   jax.ShapeDtypeStruct((n_par * 8, _LANES), jnp.float32)),
        grid_spec=pltpu.PrefetchScalarGridSpec(
            num_scalar_prefetch=0,
            grid=(n_par, bpc),
            in_specs=[row_spec, row_spec, row_spec],
            out_specs=(acc_spec, acc_spec)),
        compiler_params=pltpu.CompilerParams(
            dimension_semantics=("parallel", "arbitrary"),
            vmem_limit_bytes=_VMEM_LIMIT_BYTES),
        cost_estimate=cost,
    )(l2d, t2d, m2d)
    return jnp.sum(loss_part), jnp.sum(mask_part)


def _elementwise(logits, targets, mask, block_rows, out_dtype):
    shape = logits.shape
    n_elems = int(math.prod(shape))
    out_dtype = jnp.dtype(out_dtype or jnp.float32)
    m_rows = max(1, _cdiv(n_elems, _LANES))
    want = m_rows * _LANES

    def _slab(x):
        f = jnp.reshape(x, (-1,))
        if int(f.shape[0]) != want:
            # Ragged fallback pad; reduction='none' is the rare path.
            f = jnp.pad(f, (0, want - int(f.shape[0])))
        return f.reshape(m_rows, _LANES)

    l2d, t2d, m2d = _slab(logits), _slab(targets), _slab(mask)

    if block_rows is None:
        block_rows = _auto_block_rows(
            sum(a.dtype.itemsize for a in (l2d, t2d, m2d)) + out_dtype.itemsize)
    tm = m_rows if m_rows <= block_rows else block_rows
    n_blocks = _cdiv(m_rows, tm)

    in_bytes = sum(int(a.size) * a.dtype.itemsize for a in (l2d, t2d, m2d))
    cost = pl.CostEstimate(flops=9 * want, transcendentals=3 * want,
                           bytes_accessed=in_bytes + want * out_dtype.itemsize)

    out2d = pl.pallas_call(
        _elementwise_kernel,
        out_shape=jax.ShapeDtypeStruct((m_rows, _LANES), out_dtype),
        grid_spec=pltpu.PrefetchScalarGridSpec(
            num_scalar_prefetch=0,
            grid=(n_blocks,),
            in_specs=[pl.BlockSpec((tm, _LANES), lambda i: (i, 0))] * 3,
            out_specs=pl.BlockSpec((tm, _LANES), lambda i: (i, 0))),
        compiler_params=pltpu.CompilerParams(
            dimension_semantics=("parallel",),
            vmem_limit_bytes=_VMEM_LIMIT_BYTES),
        cost_estimate=cost,
    )(l2d, t2d, m2d)

    out = out2d.reshape(-1)
    if want != n_elems:
        out = out[:n_elems]
    return out.reshape(shape)


@functools.partial(jax.jit, static_argnames=("reduction", "block_rows", "out_dtype"))
def masked_bce_with_logits_loss(logits, targets, mask,
                                reduction="mean", block_rows=None, out_dtype=None):
    assert logits.shape == targets.shape == mask.shape
    if block_rows is not None:
        assert block_rows % 8 == 0 and block_rows > 0

    # bool -> int8 is the only wrapper-side dtype change (1 B/elem; Mosaic i1
    # VMEM inputs are not relied on).  Everything else stays in native dtype.
    def _native(x):
        return x.astype(jnp.int8) if x.dtype == jnp.bool_ else x
    logits, targets, mask = _native(logits), _native(targets), _native(mask)

    if reduction not in ("mean", "sum"):
        # PyTorch module falls through to the elementwise masked loss.
        return _elementwise(logits, targets, mask, block_rows, out_dtype)

    n_elems = int(math.prod(logits.shape))
    flat_l = jnp.reshape(logits, (-1,))
    flat_t = jnp.reshape(targets, (-1,))
    flat_m = jnp.reshape(mask, (-1,))

    m_rows = n_elems // _LANES
    loss_sum = jnp.zeros((), jnp.float32)
    mask_sum = jnp.zeros((), jnp.float32)
    tail_start = 0

    if m_rows >= 8:
        bulk = m_rows * _LANES
        if bulk == n_elems:
            # Aligned fast path: the reshape is a free bitcast -- no HBM copy.
            def _slab(f):
                return f.reshape(m_rows, _LANES)
        else:
            # TODO(synk): this prefix slice is still one read+write pass over
            # the bulk; removing it would need a 1-D-input / manual-DMA kernel.
            def _slab(f):
                return jax.lax.slice(f, (0,), (bulk,)).reshape(m_rows, _LANES)
        loss_sum, mask_sum = _reduced_sums(
            _slab(flat_l), _slab(flat_t), _slab(flat_m), m_rows, block_rows)
        tail_start = bulk

    if tail_start < n_elems:
        # < 128 leftover elements (or the whole thing for tiny inputs): plain JAX.
        tl = jax.lax.slice(flat_l, (tail_start,), (n_elems,)).astype(jnp.float32)
        tt = jax.lax.slice(flat_t, (tail_start,), (n_elems,)).astype(jnp.float32)
        tmk = jax.lax.slice(flat_m, (tail_start,), (n_elems,)).astype(jnp.float32)
        loss_sum = loss_sum + jnp.sum(_masked_bce_elem(tl, tt, tmk))
        mask_sum = mask_sum + jnp.sum(tmk)

    if reduction == "sum":
        return loss_sum
    # 'mean': NaN/Inf when sum(mask) == 0, matching the PyTorch module.
    return loss_sum / mask_sum


# --------------------------------------------------------------------------- #
# Reference + self-test
# --------------------------------------------------------------------------- #
def _reference(logits, targets, mask, reduction="mean"):
    x = logits.astype(jnp.float32)
    t = targets.astype(jnp.float32)
    m = mask.astype(jnp.float32)
    p = jax.nn.sigmoid(x)
    loss = -(t * jnp.log(p + _EPS) + (1.0 - t) * jnp.log(1.0 - p + _EPS)) * m
    if reduction == "mean":
        return jnp.sum(loss) / jnp.sum(m)
    if reduction == "sum":
        return jnp.sum(loss)
    return loss


if __name__ == "__main__":
    key = jax.random.PRNGKey(0)
    k1, k2, k3 = jax.random.split(key, 3)

    # 1) Primary NCHW-style shape, reduction='mean', auto (dtype-aware) tiling.
    shape = (2, 4, 16, 16)
    logits = jax.random.normal(k1, shape, dtype=jnp.float32)
    targets = (jax.random.uniform(k2, shape) > 0.5).astype(jnp.float32)
    mask = (jax.random.uniform(k3, shape) > 0.3).astype(jnp.float32)

    out = jax.block_until_ready(masked_bce_with_logits_loss(logits, targets, mask))
    ref = _reference(logits, targets, mask, "mean")
    assert jnp.allclose(out, ref, rtol=1e-5, atol=1e-5), (out, ref)

    # 2) Narrow dtypes end-to-end (bf16 logits, int8 mask): no wrapper upcasts.
    out_b = jax.block_until_ready(
        masked_bce_with_logits_loss(logits.astype(jnp.bfloat16), targets,
                                    mask.astype(jnp.int8)))
    ref_b = _reference(logits.astype(jnp.bfloat16), targets,
                       mask.astype(jnp.int8), "mean")
    assert jnp.allclose(out_b, ref_b, rtol=1e-5, atol=1e-5), (out_b, ref_b)

    # 3) Ragged size + small blocks: exercises the per-step pl.when tail mask,
    #    the plain-JAX <128-element remainder, and the 'sum' reduction.
    shape2 = (3, 5, 7, 11)
    l2 = jax.random.normal(k1, shape2, dtype=jnp.float32)
    t2 = (jax.random.uniform(k2, shape2) > 0.5).astype(jnp.float32)
    m2 = (jax.random.uniform(k3, shape2) > 0.3).astype(jnp.float32)
    out_sum = jax.block_until_ready(
        masked_bce_with_logits_loss(l2, t2, m2, reduction="sum", block_rows=8))
    assert jnp.allclose(out_sum, _reference(l2, t2, m2, "sum"),
                        rtol=1e-5, atol=1e-5), out_sum

    # 4) reduction='none' (elementwise) path on the ragged shape.
    out_none = jax.block_until_ready(
        masked_bce_with_logits_loss(l2, t2, m2, reduction="none", block_rows=8))
    assert out_none.shape == shape2
    assert jnp.allclose(out_none, _reference(l2, t2, m2, "none"),
                        rtol=1e-5, atol=1e-5)

    print("KERNEL_OK")
</pallas_src>

<mosaic_0001>
module attributes {stable_mosaic.version = 11 : i64} {
  func.func @_partial_sum_kernel(%arg0: i32, %arg1: i32, %arg2: memref<16x128xf32, #tpu.memory_space<vmem>>, %arg3: memref<16x128xf32, #tpu.memory_space<vmem>>, %arg4: memref<16x128xf32, #tpu.memory_space<vmem>>, %arg5: memref<8x128xf32, #tpu.memory_space<vmem>>, %arg6: memref<8x128xf32, #tpu.memory_space<vmem>>) attributes {dimension_semantics = [#tpu.dimension_semantics<parallel>, #tpu.dimension_semantics<arbitrary>], iteration_bounds = array<i64: 1, 1>, scalar_prefetch = 0 : i64, scratch_operands = 0 : i64, tpu.core_type = #tpu.core_type<tc>, window_params = [{transform_indices = @transform_0, window_bounds = array<i64: 16, 128>}, {transform_indices = @transform_1, window_bounds = array<i64: 16, 128>}, {transform_indices = @transform_2, window_bounds = array<i64: 16, 128>}, {transform_indices = @transform_3, window_bounds = array<i64: 8, 128>}, {transform_indices = @transform_4, window_bounds = array<i64: 8, 128>}]} {
    %c0_i32 = arith.constant 0 : i32
    %0 = arith.cmpi eq, %arg1, %c0_i32 : i32
    %1 = arith.extui %0 : i1 to i32
    %c0_i32_0 = arith.constant 0 : i32
    %2 = arith.cmpi ne, %1, %c0_i32_0 : i32
    scf.if %2 {
      %cst_21 = arith.constant 0.000000e+00 : f32
      %37 = vector.broadcast %cst_21 : f32 to vector<8x128xf32>
      %c0_22 = arith.constant 0 : index
      %c0_23 = arith.constant 0 : index
      %38 = vector.load %arg5[%c0_22, %c0_23] : memref<8x128xf32, #tpu.memory_space<vmem>>, vector<8x128xf32>
      tpu.vector_store %arg5[%c0_22, %c0_23], %37 {strides = array<i32>} : memref<8x128xf32, #tpu.memory_space<vmem>>, vector<8x128xf32>,
      %cst_24 = arith.constant 0.000000e+00 : f32
      %39 = vector.broadcast %cst_24 : f32 to vector<8x128xf32>
      %c0_25 = arith.constant 0 : index
      %c0_26 = arith.constant 0 : index
      %40 = vector.load %arg6[%c0_25, %c0_26] : memref<8x128xf32, #tpu.memory_space<vmem>>, vector<8x128xf32>
      tpu.vector_store %arg6[%c0_25, %c0_26], %39 {strides = array<i32>} : memref<8x128xf32, #tpu.memory_space<vmem>>, vector<8x128xf32>,
    } else {
    }
    %c0 = arith.constant 0 : index
    %c0_1 = arith.constant 0 : index
    %3 = vector.load %arg2[%c0, %c0_1] : memref<16x128xf32, #tpu.memory_space<vmem>>, vector<16x128xf32>
    %c0_2 = arith.constant 0 : index
    %c0_3 = arith.constant 0 : index
    %4 = vector.load %arg3[%c0_2, %c0_3] : memref<16x128xf32, #tpu.memory_space<vmem>>, vector<16x128xf32>
    %c0_4 = arith.constant 0 : index
    %c0_5 = arith.constant 0 : index
    %5 = vector.load %arg4[%c0_4, %c0_5] : memref<16x128xf32, #tpu.memory_space<vmem>>, vector<16x128xf32>
    %6 = arith.negf %3 : vector<16x128xf32>
    %7 = math.exp %6 : vector<16x128xf32>
    %cst = arith.constant 1.000000e+00 : f32
    %8 = vector.broadcast %cst : f32 to vector<16x128xf32>
    %9 = arith.addf %8, %7 : vector<16x128xf32>
    %10 = arith.divf %8, %9 : vector<16x128xf32>
    %cst_6 = arith.constant 1.000000e-07 : f32
    %11 = vector.broadcast %cst_6 : f32 to vector<16x128xf32>
    %12 = arith.addf %10, %11 : vector<16x128xf32>
    %13 = math.log %12 : vector<16x128xf32>
    %14 = arith.mulf %4, %13 : vector<16x128xf32>
    %cst_7 = arith.constant 1.000000e+00 : f32
    %15 = vector.broadcast %cst_7 : f32 to vector<16x128xf32>
    %16 = arith.subf %15, %4 : vector<16x128xf32>
    %cst_8 = arith.constant 1.000000e+00 : f32
    %17 = vector.broadcast %cst_8 : f32 to vector<16x128xf32>
    %18 = arith.subf %17, %10 : vector<16x128xf32>
    %cst_9 = arith.constant 1.000000e-07 : f32
    %19 = vector.broadcast %cst_9 : f32 to vector<16x128xf32>
    %20 = arith.addf %18, %19 : vector<16x128xf32>
    %21 = math.log %20 : vector<16x128xf32>
    %22 = arith.mulf %16, %21 : vector<16x128xf32>
    %23 = arith.addf %14, %22 : vector<16x128xf32>
    %cst_10 = arith.constant 0.000000e+00 : f32
    %24 = vector.broadcast %cst_10 : f32 to vector<16x128xf32>
    %25 = arith.subf %24, %23 : vector<16x128xf32>
    %26 = arith.mulf %25, %5 : vector<16x128xf32>
    %c0_11 = arith.constant 0 : index
    %c0_12 = arith.constant 0 : index
    %27 = vector.load %arg5[%c0_11, %c0_12] : memref<8x128xf32, #tpu.memory_space<vmem>>, vector<8x128xf32>
    %28 = vector.shape_cast %26 : vector<16x128xf32> to vector<2x8x128xf32>
    %cst_13 = arith.constant dense<0.000000e+00> : vector<8x128xf32>
    %29 = vector.multi_reduction <add>, %28, %cst_13 [0] : vector<2x8x128xf32> to vector<8x128xf32>
    %30 = arith.addf %27, %29 : vector<8x128xf32>
    %c0_14 = arith.constant 0 : index
    %c0_15 = arith.constant 0 : index
    %31 = vector.load %arg5[%c0_14, %c0_15] : memref<8x128xf32, #tpu.memory_space<vmem>>, vector<8x128xf32>
    tpu.vector_store %arg5[%c0_14, %c0_15], %30 {strides = array<i32>} : memref<8x128xf32, #tpu.memory_space<vmem>>, vector<8x128xf32>,
    %c0_16 = arith.constant 0 : index
    %c0_17 = arith.constant 0 : index
    %32 = vector.load %arg6[%c0_16, %c0_17] : memref<8x128xf32, #tpu.memory_space<vmem>>, vector<8x128xf32>
    %33 = vector.shape_cast %5 : vector<16x128xf32> to vector<2x8x128xf32>
    %cst_18 = arith.constant dense<0.000000e+00> : vector<8x128xf32>
    %34 = vector.multi_reduction <add>, %33, %cst_18 [0] : vector<2x8x128xf32> to vector<8x128xf32>
    %35 = arith.addf %32, %34 : vector<8x128xf32>
    %c0_19 = arith.constant 0 : index
    %c0_20 = arith.constant 0 : index
    %36 = vector.load %arg6[%c0_19, %c0_20] : memref<8x128xf32, #tpu.memory_space<vmem>>, vector<8x128xf32>
    tpu.vector_store %arg6[%c0_19, %c0_20], %35 {strides = array<i32>} : memref<8x128xf32, #tpu.memory_space<vmem>>, vector<8x128xf32>,
    return
  }
  func.func @transform_0(%arg0: i32, %arg1: i32) -> (i32, i32) {
    %c1_i32 = arith.constant 1 : i32
    %0 = arith.muli %arg0, %c1_i32 : i32
    %1 = arith.addi %0, %arg1 : i32
    %c0_i32 = arith.constant 0 : i32
    %2 = arith.minsi %1, %c0_i32 : i32
    %c0_i32_0 = arith.constant 0 : i32
    %c0_i32_1 = arith.constant 0 : i32
    return %2, %c0_i32_0 : i32, i32
  }
  func.func @transform_1(%arg0: i32, %arg1: i32) -> (i32, i32) {
    %c1_i32 = arith.constant 1 : i32
    %0 = arith.muli %arg0, %c1_i32 : i32
    %1 = arith.addi %0, %arg1 : i32
    %c0_i32 = arith.constant 0 : i32
    %2 = arith.minsi %1, %c0_i32 : i32
    %c0_i32_0 = arith.constant 0 : i32
    %c0_i32_1 = arith.constant 0 : i32
    return %2, %c0_i32_0 : i32, i32
  }
  func.func @transform_2(%arg0: i32, %arg1: i32) -> (i32, i32) {
    %c1_i32 = arith.constant 1 : i32
    %0 = arith.muli %arg0, %c1_i32 : i32
    %1 = arith.addi %0, %arg1 : i32
    %c0_i32 = arith.constant 0 : i32
    %2 = arith.minsi %1, %c0_i32 : i32
    %c0_i32_0 = arith.constant 0 : i32
    %c0_i32_1 = arith.constant 0 : i32
    return %2, %c0_i32_0 : i32, i32
  }
  func.func @transform_3(%arg0: i32, %arg1: i32) -> (i32, i32) {
    %c0_i32 = arith.constant 0 : i32
    %c0_i32_0 = arith.constant 0 : i32
    return %arg0, %c0_i32 : i32, i32
  }
  func.func @transform_4(%arg0: i32, %arg1: i32) -> (i32, i32) {
    %c0_i32 = arith.constant 0 : i32
    %c0_i32_0 = arith.constant 0 : i32
    return %arg0, %c0_i32 : i32, i32
  }
}

</mosaic_0001>

<bundles_post_ra>
// kernel: masked_bce_with_logits_loss.1
= control target key start
LH: loop header
LB: loop body
LE: loop exit
PB: predicated region body
PF: predicated region fallthrough
CT: control target
= control target key end

     0   :  { %s298_s0 = inlined_call_operand.vmem [shape: f32[16,128], index: 0, kind: input, shape index: {}]   ;;  %s299_s2 = inlined_call_operand.vmem [shape: f32[16,128], index: 2, kind: input, shape index: {}]   ;;  %s300_s4 = inlined_call_operand.vmem [shape: f32[8,128], index: 4, kind: output, shape index: {1}]   ;;  %s301_s1 = inlined_call_operand.vmem [shape: f32[16,128], index: 1, kind: input, shape index: {}]   ;;  %s302_s3 = inlined_call_operand.vmem [shape: f32[8,128], index: 3, kind: output, shape index: {0}]  }
   0x1   :  { %v118_v0 = vld [vmem:[%s298_s0] sm:$0xff]  ;;  %v119_v1 = vld [vmem:[%s298_s0 + $0x8] sm:$0xff] }
   0x2   :  { %v222_v2 = vmul.f32 -1.442695, %v118_v0  ;;  %v223_v3 = vmul.f32 -1.442695, %v119_v1  ;;  %v275_v9 = vld [vmem:[%s299_s2] sm:$0xff]  ;;  %v280_v10 = vld [vmem:[%s299_s2 + $0x8] sm:$0xff] }
   0x3   :  { %v193_v13 = vadd.f32 %v280_v10, %v275_v9  ;;  %v120_v37 = vld [vmem:[%s301_s1] sm:$0xff]  ;;  %v121_v38 = vld [vmem:[%s301_s1 + $0x8] sm:$0xff] }
   0x4   :  { %225 = vpow2.f32 %v222_v2  ;;  %v170_v42 = vsub.f32 1.0, %v120_v37  ;;  %v171_v45 = vsub.f32 1.0, %v121_v38 }
   0x5   :  { %227 = vpow2.f32 %v223_v3  ;;  %195 = vst [vmem:[%s300_s4] sm:$0xff] %v193_v13 }
   0xa   :  { %v226_v4 = vpop.eup %225 }
   0xb   :  { %v228_v5 = vpop.eup %227  ;;  %v130_v6 = vadd.f32 1.0, %v226_v4 }
   0xc   :  { %v131_v7 = vadd.f32 1.0, %v228_v5 }
   0xd   :  { %229 = vrcp.f32 %v130_v6  ;;  %vm137_vm0 = vweird.f32 %v130_v6  ;;  %v141_v14 = vand.u32 2147483647, %v130_v6  ;;  %v143_v15 = vand.u32 2147483648, %v130_v6 }
   0xe   :  { %231 = vrcp.f32 %v131_v7  ;;  %v158_v18 = vand.u32 2147483648, %v131_v7  ;;  %vm152_vm2 = vweird.f32 %v131_v7  ;;  %v156_v20 = vand.u32 2147483647, %v131_v7 }
   0xf   :  { %v144_v22 = vor.u32 1.1754944e-38, %v143_v15  ;;  %vm142_vm5 = vcmp.eq.f32.partialorder %v141_v14, 8.507059e+37 }
  0x10   :  { %v159_v25 = vor.u32 1.1754944e-38, %v158_v18  ;;  %vm157_vm7 = vcmp.eq.f32.partialorder %v156_v20, 8.507059e+37 }
  0x13   :  { %v230_v8 = vpop.eup %229 }
  0x14   :  { %v232_v11 = vpop.eup %231  ;;  %v133_v12 = vmul.f32 %v230_v8, %v130_v6  ;;  %vm138_vm1 = vweird.f32 %v230_v8 }
  0x15   :  { %v148_v16 = vmul.f32 %v232_v11, %v131_v7  ;;  %vm153_vm3 = vweird.f32 %v232_v11  ;;  %vm139_vm4 = vmor %vm137_vm0, %vm138_vm1 }
  0x16   :  { %v134_v17 = vsub.f32 1.0, %v133_v12  ;;  %vm154_vm6 = vmor %vm152_vm2, %vm153_vm3 }
  0x17   :  { %v149_v19 = vsub.f32 1.0, %v148_v16 }
  0x18   :  { %v135_v21 = vmul.f32 %v230_v8, %v134_v17 }
  0x19   :  { %v150_v23 = vmul.f32 %v232_v11, %v149_v19 }
  0x1a   :  { %v136_v24 = vadd.f32 %v230_v8, %v135_v21 }
  0x1b   :  { %v151_v26 = vadd.f32 %v232_v11, %v150_v23 }
  0x1c   :  { %v140_v27 = vsel %vm139_vm4, %v230_v8, %v136_v24 }
  0x1d   :  { %v145_v28 = vsel %vm142_vm5, %v144_v22, %v140_v27  ;;  %v155_v29 = vsel %vm154_vm6, %v232_v11, %v151_v26 }
  0x1e   :  { %v160_v30 = vsel %vm157_vm7, %v159_v25, %v155_v29  ;;  %v162_v31 = vadd.f32 1e-07, %v145_v28  ;;  %v172_v32 = vsub.f32 1.0, %v145_v28 }
  0x1f   :  { %v163_v33 = vadd.f32 1e-07, %v160_v30  ;;  %v173_v34 = vsub.f32 1.0, %v160_v30 }
  0x20   :  { %233 = vlog2.f32 %v162_v31  ;;  %v174_v35 = vadd.f32 1e-07, %v172_v32 }
  0x21   :  { %235 = vlog2.f32 %v163_v33  ;;  %v175_v36 = vadd.f32 1e-07, %v173_v34 }
  0x22   :  { %237 = vlog2.f32 %v174_v35 }
  0x23   :  { %239 = vlog2.f32 %v175_v36 }
  0x26   :  { %v234_v39 = vpop.eup %233 }
  0x27   :  { %v236_v40 = vpop.eup %235  ;;  %v165_v41 = vmul.f32 0.6931472, %v234_v39 }
  0x28   :  { %v238_v43 = vpop.eup %237  ;;  %v167_v44 = vmul.f32 0.6931472, %v236_v40 }
  0x29   :  { %v240_v46 = vpop.eup %239  ;;  %v168_v47 = vmul.f32 %v165_v41, %v120_v37  ;;  %v177_v48 = vmul.f32 0.6931472, %v238_v43 }
  0x2a   :  { %v169_v49 = vmul.f32 %v167_v44, %v121_v38  ;;  %v179_v50 = vmul.f32 0.6931472, %v240_v46 }
  0x2b   :  { %v180_v51 = vmul.f32 %v177_v48, %v170_v42 }
  0x2c   :  { %v181_v52 = vmul.f32 %v179_v50, %v171_v45 }
  0x2d   :  { %v182_v53 = vadd.f32 %v180_v51, %v168_v47 }
  0x2e   :  { %v183_v54 = vadd.f32 %v181_v52, %v169_v49 }
  0x2f   :  { %v184_v55 = vsub.f32 0.0, %v182_v53 }
  0x30   :  { %v185_v56 = vsub.f32 0.0, %v183_v54 }
  0x31   :  { %v186_v57 = vmul.f32 %v184_v55, %v275_v9 }
  0x32   :  { %v187_v58 = vmul.f32 %v185_v56, %v280_v10 }
  0x34   :  { %v189_v59 = vadd.f32 %v187_v58, %v186_v57 }
  0x36   :  { %191 = vst [vmem:[%s302_s3] sm:$0xff] %v189_v59 }

</bundles_post_ra>
